<compile_context>
chip_gen: v5e
topology: v5e:2x2
jax: 0.10.0
libtpu: 0.0.40
codegen_flags: <defaults>
</compile_context>

<pallas_src>
import functools

import jax
import jax.numpy as jnp
from jax import lax
from jax.experimental import pallas as pl
from jax.experimental.pallas import tpu as pltpu

LANES = 128


def _round_up(x, m):
    return ((x + m - 1) // m) * m


def _detect_num_tensorcores():
    """2 on v7x-class chips (2 TensorCores per chip), else 1."""
    try:
        kind = jax.devices()[0].device_kind.lower()
    except Exception:
        return 1
    return 2 if "v7" in kind else 1


def _dice_kernel(p_ref, t_ref, o_ref, acc_ref, *, steps, tile_rows, rows,
                 mask_rows):
    # grid = (num_slices, steps); axis 0 is (core-)parallel, axis 1 reduces.
    c = pl.program_id(0)
    k = pl.program_id(1)

    @pl.when(k == 0)
    def _init():
        acc_ref[...] = jnp.zeros_like(acc_ref)

    # Load each tile exactly once; both accumulations feed off these values.
    p = p_ref[...].astype(jnp.float32)      # (B, tile_rows, 128)
    t = t_ref[...].astype(jnp.float32)

    if mask_rows:
        # Ragged row tail / rounded-up grid blocks: zero out rows past `rows`.
        # The mask's VALU cost is hidden under the DMA (kernel is HBM-bound),
        # and this path is only compiled in when statically required.
        block_idx = c * steps + k
        rem = rows - block_idx * tile_rows   # <= 0 for fully out-of-range blocks
        row_ids = lax.broadcasted_iota(jnp.int32, p.shape, 1)
        valid = row_ids < rem
        zero = jnp.float32(0.0)
        p = jnp.where(valid, p, zero)
        t = jnp.where(valid, t, zero)

    # Lane-wise partial sums: elementwise mul/add plus a sublane-axis sum; the
    # single cross-lane reduce happens once, in the tiny JAX-side finalize.
    acc_ref[0] += jnp.sum(p * t, axis=1)     # (B, 128) intersection partial
    acc_ref[1] += jnp.sum(p + t, axis=1)     # (B, 128) pred+target partial

    @pl.when(k == pl.num_programs(1) - 1)
    def _finalize():
        o_ref[0] = acc_ref[...]              # lane-dense (2, B, 128) partials


def dice_loss(pred, target, *, num_slices=None,
              input_vmem_budget_bytes=8 * 1024 * 1024,
              vmem_limit_bytes=24 * 1024 * 1024):
    """Pallas implementation of DiceLoss.forward(pred, target) -> scalar."""
    assert pred.shape == target.shape
    B = pred.shape[0]
    p2 = pred.reshape(B, -1)
    t2 = target.reshape(B, -1)
    N = p2.shape[1]

    isz_p = jnp.dtype(pred.dtype).itemsize
    isz_t = jnp.dtype(target.dtype).itemsize
    # Sublane packing: 8-row multiples for f32, 16 for bf16, 32 for int8/fp8.
    sub_mult = 8 * max(1, 4 // min(isz_p, isz_t))

    # Only pad the feature axis up to the next 128*sub_mult boundary (zeros
    # contribute nothing to any sum).  allow_input_fusion lets XLA fuse this
    # small pad into the pallas_call inputs instead of materializing it.
    align = LANES * sub_mult
    N_pad = _round_up(N, align)
    if N_pad != N:
        p2 = jnp.pad(p2, ((0, 0), (0, N_pad - N)))
        t2 = jnp.pad(t2, ((0, 0), (0, N_pad - N)))
    rows = N_pad // LANES
    p3 = p2.reshape(B, rows, LANES)
    t3 = t2.reshape(B, rows, LANES)

    if num_slices is None:
        num_slices = _detect_num_tensorcores()
    num_slices = max(1, int(num_slices))

    # Tile sizing: stay near the HBM roofline knee (order 512-2048 rows), keep
    # >= ~4 pipeline steps per slice, and respect the double-buffered VMEM
    # budget for BOTH inputs (dtypes may differ).
    bytes_per_row = 2 * B * LANES * (isz_p + isz_t)        # 2 pipeline buffers
    max_tile_rows = max(sub_mult,
                        (input_vmem_budget_bytes // bytes_per_row)
                        // sub_mult * sub_mult)
    pref_tile_rows = max(sub_mult,
                         _round_up(pl.cdiv(rows, 4 * num_slices), sub_mult))
    tile_rows = min(max_tile_rows, pref_tile_rows, 2048, rows)
    # TODO(synk): for large B, tile the batch axis in the grid instead of
    # letting tile_rows shrink (keeps per-DMA chunks >= ~32 KiB).

    blocks_total = pl.cdiv(rows, tile_rows)
    num_slices = max(1, min(num_slices, blocks_total))
    steps = pl.cdiv(blocks_total, num_slices)
    grid_blocks = num_slices * steps
    mask_rows = (rows % tile_rows != 0) or (grid_blocks != blocks_total)

    last_block = blocks_total - 1
    if grid_blocks == blocks_total:
        def in_idx(c, k):
            return (0, c * steps + k, 0)
    else:
        # Clamp grid iterations past the last real block onto it; the kernel's
        # row mask zeroes their contribution.
        def in_idx(c, k):
            return (0, jnp.minimum(c * steps + k, last_block), 0)

    in_spec = pl.BlockSpec((B, tile_rows, LANES), in_idx)
    out_spec = pl.BlockSpec((1, 2, B, LANES), lambda c, k: (c, 0, 0, 0))

    if num_slices > 1:
        dim_sem = (pltpu.CORE_PARALLEL, pltpu.ARBITRARY)   # real 2-TC split (v7x)
    else:
        dim_sem = (pltpu.ARBITRARY, pltpu.ARBITRARY)

    kernel = functools.partial(_dice_kernel, steps=steps, tile_rows=tile_rows,
                               rows=rows, mask_rows=mask_rows)

    parts = pl.pallas_call(
        kernel,
        out_shape=jax.ShapeDtypeStruct((num_slices, 2, B, LANES), jnp.float32),
        grid_spec=pltpu.PrefetchScalarGridSpec(
            num_scalar_prefetch=0,
            grid=(num_slices, steps),
            in_specs=[in_spec, in_spec],
            out_specs=out_spec,
            scratch_shapes=[pltpu.VMEM((2, B, LANES), jnp.float32)],
        ),
        compiler_params=pltpu.CompilerParams(
            dimension_semantics=dim_sem,
            vmem_limit_bytes=vmem_limit_bytes,
            allow_input_fusion=[True, True],
        ),
    )(p3, t3)

    # Tiny finalize in plain JAX: combine slice/lane partials, then dice.
    sums = jnp.sum(parts, axis=(0, 3))        # (2, B) in float32
    smooth = jnp.float32(1.0)
    dice_score = (2.0 * sums[0] + smooth) / (sums[1] + smooth)
    return jnp.float32(1.0) - jnp.sum(dice_score) / jnp.float32(B)


def dice_loss_ref(pred, target):
    """Pure-JAX reference matching the PyTorch module exactly."""
    smooth = 1.0
    size = pred.shape[0]
    p = pred.reshape(size, -1).astype(jnp.float32)
    t = target.reshape(size, -1).astype(jnp.float32)
    inter = jnp.sum(p * t, axis=1)
    dice_score = (2.0 * inter + smooth) / (jnp.sum(p, axis=1) + jnp.sum(t, axis=1) + smooth)
    return 1.0 - jnp.sum(dice_score) / size


if __name__ == "__main__":
    key = jax.random.PRNGKey(0)
    k1, k2, k3, k4 = jax.random.split(key, 4)

    # Case 1: aligned features, NCHW = (2, 4, 16, 16)  -> N = 1024.
    pred1 = jax.nn.sigmoid(jax.random.normal(k1, (2, 4, 16, 16), dtype=jnp.float32))
    targ1 = (jax.random.uniform(k2, (2, 4, 16, 16)) > 0.5).astype(jnp.float32)

    # Case 2: unaligned features (2, 2, 50, 50) -> N = 5000; exercises the
    # small alignment pad and the in-kernel ragged-row mask path.
    pred2 = jax.nn.sigmoid(jax.random.normal(k3, (2, 2, 50, 50), dtype=jnp.float32))
    targ2 = (jax.random.uniform(k4, (2, 2, 50, 50)) > 0.5).astype(jnp.float32)

    fn = jax.jit(dice_loss)
    for pred, targ in ((pred1, targ1), (pred2, targ2)):
        loss = jax.block_until_ready(fn(pred, targ))
        ref = jax.block_until_ready(dice_loss_ref(pred, targ))
        assert jnp.allclose(loss, ref, rtol=1e-5, atol=1e-5), (loss, ref)

    print("KERNEL_OK")
</pallas_src>

<mosaic_0001>
module attributes {stable_mosaic.version = 11 : i64} {
  func.func @_dice_kernel(%arg0: i32, %arg1: i32, %arg2: memref<2x8x128xf32, #tpu.memory_space<vmem>>, %arg3: memref<2x8x128xf32, #tpu.memory_space<vmem>>, %arg4: memref<1x2x2x128xf32, #tpu.memory_space<vmem>>, %arg5: memref<2x2x128xf32, #tpu.memory_space<vmem>>) attributes {dimension_semantics = [#tpu.dimension_semantics<arbitrary>, #tpu.dimension_semantics<arbitrary>], iteration_bounds = array<i64: 1, 1>, scalar_prefetch = 0 : i64, scratch_operands = 1 : i64, tpu.core_type = #tpu.core_type<tc>, window_params = [{transform_indices = @transform_0, window_bounds = array<i64: 2, 8, 128>}, {transform_indices = @transform_1, window_bounds = array<i64: 2, 8, 128>}, {transform_indices = @transform_2, window_bounds = array<i64: 1, 2, 2, 128>}]} {
    %c0_i32 = arith.constant 0 : i32
    %0 = arith.cmpi eq, %arg1, %c0_i32 : i32
    %1 = arith.extui %0 : i1 to i32
    %c0_i32_0 = arith.constant 0 : i32
    %2 = arith.cmpi ne, %1, %c0_i32_0 : i32
    scf.if %2 {
      %cst_20 = arith.constant 0.000000e+00 : f32
      %24 = vector.broadcast %cst_20 : f32 to vector<2x2x128xf32>
      %c0_21 = arith.constant 0 : index
      %c0_22 = arith.constant 0 : index
      %c0_23 = arith.constant 0 : index
      %25 = vector.load %arg5[%c0_21, %c0_22, %c0_23] : memref<2x2x128xf32, #tpu.memory_space<vmem>>, vector<2x2x128xf32>
      tpu.vector_store %arg5[%c0_21, %c0_22, %c0_23], %24 {strides = array<i32>} : memref<2x2x128xf32, #tpu.memory_space<vmem>>, vector<2x2x128xf32>,
    } else {
    }
    %c0 = arith.constant 0 : index
    %c0_1 = arith.constant 0 : index
    %c0_2 = arith.constant 0 : index
    %3 = vector.load %arg2[%c0, %c0_1, %c0_2] : memref<2x8x128xf32, #tpu.memory_space<vmem>>, vector<2x8x128xf32>
    %c0_3 = arith.constant 0 : index
    %c0_4 = arith.constant 0 : index
    %c0_5 = arith.constant 0 : index
    %4 = vector.load %arg3[%c0_3, %c0_4, %c0_5] : memref<2x8x128xf32, #tpu.memory_space<vmem>>, vector<2x8x128xf32>
    %c0_6 = arith.constant 0 : index
    %c0_7 = arith.constant 0 : index
    %c0_8 = arith.constant 0 : index
    %5 = vector.load %arg5[%c0_6, %c0_7, %c0_8] : memref<2x2x128xf32, #tpu.memory_space<vmem>>, vector<1x2x128xf32>
    %6 = vector.shape_cast %5 : vector<1x2x128xf32> to vector<2x128xf32>
    %7 = arith.mulf %3, %4 : vector<2x8x128xf32>
    %cst = arith.constant dense<0.000000e+00> : vector<2x128xf32>
    %8 = vector.multi_reduction <add>, %7, %cst [1] : vector<2x8x128xf32> to vector<2x128xf32>
    %9 = arith.addf %6, %8 : vector<2x128xf32>
    %c0_9 = arith.constant 0 : index
    %c0_10 = arith.constant 0 : index
    %c0_11 = arith.constant 0 : index
    %10 = vector.load %arg5[%c0_9, %c0_10, %c0_11] : memref<2x2x128xf32, #tpu.memory_space<vmem>>, vector<1x2x128xf32>
    %11 = vector.shape_cast %10 : vector<1x2x128xf32> to vector<2x128xf32>
    %12 = vector.shape_cast %9 : vector<2x128xf32> to vector<1x2x128xf32>
    tpu.vector_store %arg5[%c0_9, %c0_10, %c0_11], %12 {strides = array<i32>} : memref<2x2x128xf32, #tpu.memory_space<vmem>>, vector<1x2x128xf32>,
    %c1 = arith.constant 1 : index
    %c0_12 = arith.constant 0 : index
    %c0_13 = arith.constant 0 : index
    %13 = vector.load %arg5[%c1, %c0_12, %c0_13] : memref<2x2x128xf32, #tpu.memory_space<vmem>>, vector<1x2x128xf32>
    %14 = vector.shape_cast %13 : vector<1x2x128xf32> to vector<2x128xf32>
    %15 = arith.addf %3, %4 : vector<2x8x128xf32>
    %cst_14 = arith.constant dense<0.000000e+00> : vector<2x128xf32>
    %16 = vector.multi_reduction <add>, %15, %cst_14 [1] : vector<2x8x128xf32> to vector<2x128xf32>
    %17 = arith.addf %14, %16 : vector<2x128xf32>
    %c1_15 = arith.constant 1 : index
    %c0_16 = arith.constant 0 : index
    %c0_17 = arith.constant 0 : index
    %18 = vector.load %arg5[%c1_15, %c0_16, %c0_17] : memref<2x2x128xf32, #tpu.memory_space<vmem>>, vector<1x2x128xf32>
    %19 = vector.shape_cast %18 : vector<1x2x128xf32> to vector<2x128xf32>
    %20 = vector.shape_cast %17 : vector<2x128xf32> to vector<1x2x128xf32>
    tpu.vector_store %arg5[%c1_15, %c0_16, %c0_17], %20 {strides = array<i32>} : memref<2x2x128xf32, #tpu.memory_space<vmem>>, vector<1x2x128xf32>,
    %c0_i32_18 = arith.constant 0 : i32
    %21 = arith.cmpi eq, %arg1, %c0_i32_18 : i32
    %22 = arith.extui %21 : i1 to i32
    %c0_i32_19 = arith.constant 0 : i32
    %23 = arith.cmpi ne, %22, %c0_i32_19 : i32
    scf.if %23 {
      %c0_20 = arith.constant 0 : index
      %c0_21 = arith.constant 0 : index
      %c0_22 = arith.constant 0 : index
      %24 = vector.load %arg5[%c0_20, %c0_21, %c0_22] : memref<2x2x128xf32, #tpu.memory_space<vmem>>, vector<2x2x128xf32>
      %c0_23 = arith.constant 0 : index
      %c0_24 = arith.constant 0 : index
      %c0_25 = arith.constant 0 : index
      %c0_26 = arith.constant 0 : index
      %25 = vector.load %arg4[%c0_23, %c0_24, %c0_25, %c0_26] : memref<1x2x2x128xf32, #tpu.memory_space<vmem>>, vector<1x2x2x128xf32>
      %26 = vector.shape_cast %25 : vector<1x2x2x128xf32> to vector<2x2x128xf32>
      %27 = vector.shape_cast %24 : vector<2x2x128xf32> to vector<1x2x2x128xf32>
      tpu.vector_store %arg4[%c0_23, %c0_24, %c0_25, %c0_26], %27 {strides = array<i32>} : memref<1x2x2x128xf32, #tpu.memory_space<vmem>>, vector<1x2x2x128xf32>,
    } else {
    }
    return
  }
  func.func @transform_0(%arg0: i32, %arg1: i32) -> (i32, i32, i32) {
    %c1_i32 = arith.constant 1 : i32
    %0 = arith.muli %arg0, %c1_i32 : i32
    %1 = arith.addi %0, %arg1 : i32
    %c0_i32 = arith.constant 0 : i32
    %c0_i32_0 = arith.constant 0 : i32
    %c0_i32_1 = arith.constant 0 : i32
    return %c0_i32, %1, %c0_i32_0 : i32, i32, i32
  }
  func.func @transform_1(%arg0: i32, %arg1: i32) -> (i32, i32, i32) {
    %c1_i32 = arith.constant 1 : i32
    %0 = arith.muli %arg0, %c1_i32 : i32
    %1 = arith.addi %0, %arg1 : i32
    %c0_i32 = arith.constant 0 : i32
    %c0_i32_0 = arith.constant 0 : i32
    %c0_i32_1 = arith.constant 0 : i32
    return %c0_i32, %1, %c0_i32_0 : i32, i32, i32
  }
  func.func @transform_2(%arg0: i32, %arg1: i32) -> (i32, i32, i32, i32) {
    %c0_i32 = arith.constant 0 : i32
    %c0_i32_0 = arith.constant 0 : i32
    %c0_i32_1 = arith.constant 0 : i32
    %c0_i32_2 = arith.constant 0 : i32
    return %arg0, %c0_i32, %c0_i32_0, %c0_i32_1 : i32, i32, i32, i32
  }
}

</mosaic_0001>

<bundles_post_ra>
// kernel: dice_loss.1
= control target key start
LH: loop header
LB: loop body
LE: loop exit
PB: predicated region body
PF: predicated region fallthrough
CT: control target
= control target key end

     0   :  { %v123_v0 = vmov 0.0   ;;  %vm72_vm0 = vcmask 1041409   ;;  %s154_s0 = inlined_call_operand.vmem [shape: f32[2,8,128], index: 0, kind: input, shape index: {}]   ;;  %s155_s1 = inlined_call_operand.vmem [shape: f32[2,8,128], index: 1, kind: input, shape index: {}]   ;;  %s156_s2 = inlined_call_operand.vmem [shape: f32[1,2,2,128], index: 2, kind: output, shape index: {}]  }
   0x1   :  { %49 = vst [vmem:[#allocation2] sm:$0x3] %v123_v0  ;;  %v51_v1 = vld [vmem:[%s154_s0] sm:$0xff]  ;;  %v52_v2 = vld [vmem:[%s154_s0 + $0x8] sm:$0xff] }
   0x2   :  { %v53_v3 = vld [vmem:[%s155_s1] sm:$0xff]  ;;  %50 = vst [vmem:[#allocation2 + $0x2] sm:$0x3] %v123_v0  ;;  %v54_v4 = vld [vmem:[%s155_s1 + $0x8] sm:$0xff] }
   0x3   :  { %v56_v5 = vmul.f32 %v53_v3, %v51_v1  ;;  %v79_v6 = vadd.f32 %v53_v3, %v51_v1  ;;  %v57_v7 = vmul.f32 %v54_v4, %v52_v2  ;;  %v80_v8 = vadd.f32 %v54_v4, %v52_v2 }
   0x5   :  { %v58_v9 = vrot.slane %v56_v5, 4  ;;  %v81_v10 = vrot.slane %v79_v6, 4  ;;  %v64_v11 = vrot.slane %v57_v7, 4  ;;  %v87_v12 = vrot.slane %v80_v8, 4 }
   0x7   :  { %v59_v13 = vadd.f32 %v58_v9, %v56_v5  ;;  %v82_v14 = vadd.f32 %v81_v10, %v79_v6  ;;  %v65_v15 = vadd.f32 %v64_v11, %v57_v7  ;;  %v88_v16 = vadd.f32 %v87_v12, %v80_v8 }
   0x8   :  { %v55_v31 = vld [vmem:[#allocation2] sm:$0x3] }
   0x9   :  { %v60_v17 = vrot.slane %v59_v13, 2  ;;  %v83_v18 = vrot.slane %v82_v14, 2  ;;  %v66_v19 = vrot.slane %v65_v15, 2  ;;  %v89_v20 = vrot.slane %v88_v16, 2  ;;  %v78_v33 = vld [vmem:[#allocation2 + $0x2] sm:$0x3] }
   0xb   :  { %v61_v21 = vadd.f32 %v60_v17, %v59_v13  ;;  %v84_v22 = vadd.f32 %v83_v18, %v82_v14  ;;  %v67_v23 = vadd.f32 %v66_v19, %v65_v15  ;;  %v90_v24 = vadd.f32 %v89_v20, %v88_v16 }
   0xd   :  { %v62_v25 = vrot.slane %v61_v21, 1  ;;  %v85_v26 = vrot.slane %v84_v22, 1  ;;  %v68_v27 = vrot.slane %v67_v23, 1  ;;  %v91_v28 = vrot.slane %v90_v24, 1 }
   0xf   :  { %v63_v29 = vadd.f32 %v62_v25, %v61_v21  ;;  %v86_v30 = vadd.f32 %v85_v26, %v84_v22  ;;  %v69_v32 = vadd.f32 %v68_v27, %v67_v23  ;;  %v92_v34 = vadd.f32 %v91_v28, %v90_v24 }
  0x11   :  { %v73_v35 = vsel %vm72_vm0, %v69_v32, %v63_v29  ;;  %v95_v36 = vsel %vm72_vm0, %v92_v34, %v86_v30 }
  0x12   :  { %v75_v37 = vadd.f32 %v73_v35, %v55_v31  ;;  %v97_v38 = vadd.f32 %v95_v36, %v78_v33 }
  0x14   :  { %76 = vst [vmem:[#allocation2] sm:$0x3] %v75_v37 }
  0x15   :  { %98 = vst [vmem:[#allocation2 + $0x2] sm:$0x3] %v97_v38 }
  0x1c   :  { %v102_v39 = vld [vmem:[#allocation2] sm:$0xf]  }
  0x1d   :  { %104 = vst [vmem:[%s156_s2] sm:$0xf] %v102_v39  }

</bundles_post_ra>
